<compile_context>
chip_gen: v7x
topology: tpu7x:2x2x1
jax: 0.10.0
libtpu: 0.0.40
codegen_flags: <defaults>
</compile_context>

<pallas_src>
import numpy as np
import jax
import jax.numpy as jnp
from jax import lax
from jax.experimental import pallas as pl
from jax.experimental.pallas import tpu as pltpu

EPSILON = float(np.finfo(np.float32).eps)


def _round_up(n, m):
    return ((n + m - 1) // m) * m


# ---------------------------------------------------------------------------
# Fused layer kernel (serial over layers):
#   h <- h * (x @ W2_i^T) / (h @ W1'_i^T + l1 + EPS)
# ---------------------------------------------------------------------------
def _make_fused_kernel(l1_plus_eps):
    def kernel(h_ref, x_ref, w1_ref, w2_ref, o_ref):
        i = pl.program_id(0)

        # Output block has a constant block index across the layer axis, so it
        # stays resident in VMEM and serves as the carried state h.
        @pl.when(i == 0)
        def _():
            o_ref[...] = h_ref[...]

        y = o_ref[...]                                   # (B_p, C_p) f32

        # numerator: x @ W2_i^T  (contract the features axis)
        num = lax.dot_general(
            x_ref[...], w2_ref[0],
            (((1,), (1,)), ((), ())),
            preferred_element_type=jnp.float32)

        # denominator: y @ (W1_i + l2*I)^T + (l1 + EPS)  (l2 folded into W1)
        den = lax.dot_general(
            y, w1_ref[0],
            (((1,), (1,)), ((), ())),
            preferred_element_type=jnp.float32) + l1_plus_eps

        o_ref[...] = y * (num * pl.reciprocal(den, approx=False))

    return kernel


def unsuper_net_forward(h, x, w1_stack, w2_stack, l_1=0.0, l_2=0.0):
    """Deep-NMF forward: n_layers multiplicative updates.

    h:        (B, comp)               float32
    x:        (B, features)           float32
    w1_stack: (n_layers, comp, comp)       (PyTorch Linear layout: out, in)
    w2_stack: (n_layers, comp, features)
    """
    B, comp = h.shape
    _, features = x.shape
    n_layers = w1_stack.shape[0]

    # Lane-dense padding: comp/features -> multiples of 128, batch -> multiple of 8.
    B_p = _round_up(B, 8)
    C_p = _round_up(comp, 128)
    F_p = _round_up(features, 128)

    h_p = jnp.pad(h.astype(jnp.float32), ((0, B_p - B), (0, C_p - comp)))
    x_p = jnp.pad(x.astype(jnp.float32), ((0, B_p - B), (0, F_p - features)))
    w1_p = jnp.pad(w1_stack.astype(jnp.float32),
                   ((0, 0), (0, C_p - comp), (0, C_p - comp)))
    w2_p = jnp.pad(w2_stack.astype(jnp.float32),
                   ((0, 0), (0, C_p - comp), (0, F_p - features)))

    # Fold the l2*h term into the fc1 weight:  den = y @ (W1 + l2*I)^T + (l1+EPS).
    # (Padded h columns are zero, so the extra l2 on padded diagonal entries is inert.)
    w1_eff = w1_p + float(l_2) * jnp.eye(C_p, dtype=jnp.float32)[None]

    kernel = _make_fused_kernel(float(l_1) + EPSILON)

    out_p = pl.pallas_call(
        kernel,
        out_shape=jax.ShapeDtypeStruct((B_p, C_p), jnp.float32),
        grid_spec=pltpu.PrefetchScalarGridSpec(
            num_scalar_prefetch=0,
            grid=(n_layers,),
            in_specs=[
                pl.BlockSpec((B_p, C_p), lambda i: (0, 0)),        # h0 (read at i==0)
                pl.BlockSpec((B_p, F_p), lambda i: (0, 0)),        # x  (layer-invariant)
                pl.BlockSpec((1, C_p, C_p), lambda i: (i, 0, 0)),  # W1' of layer i
                pl.BlockSpec((1, C_p, F_p), lambda i: (i, 0, 0)),  # W2  of layer i
            ],
            out_specs=pl.BlockSpec((B_p, C_p), lambda i: (0, 0)),  # resident carry
        ),
        compiler_params=pltpu.CompilerParams(
            dimension_semantics=("arbitrary",)),        # serial: carried state
    )(h_p, x_p, w1_eff, w2_p)

    return out_p[:B, :comp]


def reference_forward(h, x, w1_stack, w2_stack, l_1=0.0, l_2=0.0):
    """Pure-JAX reference matching the PyTorch module."""
    for i in range(w1_stack.shape[0]):
        num = x @ w2_stack[i].T
        den = h @ w1_stack[i].T + l_2 * h + l_1 + EPSILON
        h = h * (num / den)
    return h


if __name__ == "__main__":
    # Small, deterministic problem: n_layers=4, batch=8, comp=32, features=128.
    n_layers, B, comp, features = 4, 8, 32, 128
    l_1, l_2 = 0.1, 0.05

    key = jax.random.PRNGKey(0)
    k_h, k_x, k_w1, k_w2 = jax.random.split(key, 4)

    # NMF-style non-negative inputs / weights (well-posed multiplicative updates).
    h0 = jax.random.uniform(k_h, (B, comp), dtype=jnp.float32)
    x = jax.random.uniform(k_x, (B, features), dtype=jnp.float32)
    w1_stack = jax.random.uniform(k_w1, (n_layers, comp, comp), dtype=jnp.float32)
    w2_stack = jax.random.uniform(k_w2, (n_layers, comp, features), dtype=jnp.float32)

    out = unsuper_net_forward(h0, x, w1_stack, w2_stack, l_1, l_2)
    out = jax.block_until_ready(out)

    ref = reference_forward(h0, x, w1_stack, w2_stack, l_1, l_2)
    np.testing.assert_allclose(np.asarray(out), np.asarray(ref), rtol=1e-5, atol=1e-5)

    print("KERNEL_OK")
</pallas_src>

<mosaic_0001>
module attributes {stable_mosaic.version = 11 : i64} {
  func.func @kernel(%arg0: i32, %arg1: memref<8x128xf32, #tpu.memory_space<vmem>>, %arg2: memref<8x128xf32, #tpu.memory_space<vmem>>, %arg3: memref<1x128x128xf32, #tpu.memory_space<vmem>>, %arg4: memref<1x128x128xf32, #tpu.memory_space<vmem>>, %arg5: memref<8x128xf32, #tpu.memory_space<vmem>>) attributes {dimension_semantics = [#tpu.dimension_semantics<arbitrary>], iteration_bounds = array<i64: 4>, scalar_prefetch = 0 : i64, scratch_operands = 0 : i64, tpu.core_type = #tpu.core_type<tc>, window_params = [{pipeline_mode = #tpu.pipeline_mode<synchronous>, transform_indices = @transform_0, window_bounds = array<i64: 8, 128>}, {pipeline_mode = #tpu.pipeline_mode<synchronous>, transform_indices = @transform_1, window_bounds = array<i64: 8, 128>}, {transform_indices = @transform_2, window_bounds = array<i64: 1, 128, 128>}, {transform_indices = @transform_3, window_bounds = array<i64: 1, 128, 128>}, {pipeline_mode = #tpu.pipeline_mode<synchronous>, transform_indices = @transform_4, window_bounds = array<i64: 8, 128>}]} {
    %c0_i32 = arith.constant 0 : i32
    %0 = arith.cmpi eq, %arg0, %c0_i32 : i32
    %1 = arith.extui %0 : i1 to i32
    %c0_i32_0 = arith.constant 0 : i32
    %2 = arith.cmpi ne, %1, %c0_i32_0 : i32
    scf.if %2 {
      %c0_14 = arith.constant 0 : index
      %c0_15 = arith.constant 0 : index
      %17 = vector.load %arg1[%c0_14, %c0_15] : memref<8x128xf32, #tpu.memory_space<vmem>>, vector<8x128xf32>
      %c0_16 = arith.constant 0 : index
      %c0_17 = arith.constant 0 : index
      %18 = vector.load %arg5[%c0_16, %c0_17] : memref<8x128xf32, #tpu.memory_space<vmem>>, vector<8x128xf32>
      tpu.vector_store %arg5[%c0_16, %c0_17], %17 {strides = array<i32>} : memref<8x128xf32, #tpu.memory_space<vmem>>, vector<8x128xf32>,
    } else {
    }
    %c0 = arith.constant 0 : index
    %c0_1 = arith.constant 0 : index
    %3 = vector.load %arg5[%c0, %c0_1] : memref<8x128xf32, #tpu.memory_space<vmem>>, vector<8x128xf32>
    %c0_2 = arith.constant 0 : index
    %c0_3 = arith.constant 0 : index
    %4 = vector.load %arg2[%c0_2, %c0_3] : memref<8x128xf32, #tpu.memory_space<vmem>>, vector<8x128xf32>
    %c0_4 = arith.constant 0 : index
    %c0_5 = arith.constant 0 : index
    %c0_6 = arith.constant 0 : index
    %5 = vector.load %arg4[%c0_4, %c0_5, %c0_6] : memref<1x128x128xf32, #tpu.memory_space<vmem>>, vector<1x128x128xf32>
    %6 = vector.shape_cast %5 : vector<1x128x128xf32> to vector<128x128xf32>
    %cst = arith.constant dense<0.000000e+00> : vector<8x128xf32>
    %7 = tpu.matmul %4, %6, %cst {dimension_numbers = #tpu.dot_dimension_numbers<[1], [1], [0], [0], [0, 0, 1, 0], [], []>} : vector<8x128xf32>, vector<128x128xf32>, vector<8x128xf32> -> vector<8x128xf32>
    %c0_7 = arith.constant 0 : index
    %c0_8 = arith.constant 0 : index
    %c0_9 = arith.constant 0 : index
    %8 = vector.load %arg3[%c0_7, %c0_8, %c0_9] : memref<1x128x128xf32, #tpu.memory_space<vmem>>, vector<1x128x128xf32>
    %9 = vector.shape_cast %8 : vector<1x128x128xf32> to vector<128x128xf32>
    %cst_10 = arith.constant dense<0.000000e+00> : vector<8x128xf32>
    %10 = tpu.matmul %3, %9, %cst_10 {dimension_numbers = #tpu.dot_dimension_numbers<[1], [1], [0], [0], [0, 0, 1, 0], [], []>} : vector<8x128xf32>, vector<128x128xf32>, vector<8x128xf32> -> vector<8x128xf32>
    %cst_11 = arith.constant 0.100000121 : f32
    %11 = vector.broadcast %cst_11 : f32 to vector<8x128xf32>
    %12 = arith.addf %10, %11 : vector<8x128xf32>
    %13 = tpu.reciprocal %12 : vector<8x128xf32> -> vector<8x128xf32>
    %14 = arith.mulf %7, %13 : vector<8x128xf32>
    %15 = arith.mulf %3, %14 : vector<8x128xf32>
    %c0_12 = arith.constant 0 : index
    %c0_13 = arith.constant 0 : index
    %16 = vector.load %arg5[%c0_12, %c0_13] : memref<8x128xf32, #tpu.memory_space<vmem>>, vector<8x128xf32>
    tpu.vector_store %arg5[%c0_12, %c0_13], %15 {strides = array<i32>} : memref<8x128xf32, #tpu.memory_space<vmem>>, vector<8x128xf32>,
    return
  }
  func.func @transform_0(%arg0: i32) -> (i32, i32) {
    %c0_i32 = arith.constant 0 : i32
    %c0_i32_0 = arith.constant 0 : i32
    %c0_i32_1 = arith.constant 0 : i32
    return %c0_i32, %c0_i32_0 : i32, i32
  }
  func.func @transform_1(%arg0: i32) -> (i32, i32) {
    %c0_i32 = arith.constant 0 : i32
    %c0_i32_0 = arith.constant 0 : i32
    %c0_i32_1 = arith.constant 0 : i32
    return %c0_i32, %c0_i32_0 : i32, i32
  }
  func.func @transform_2(%arg0: i32) -> (i32, i32, i32) {
    %c0_i32 = arith.constant 0 : i32
    %c0_i32_0 = arith.constant 0 : i32
    %c0_i32_1 = arith.constant 0 : i32
    return %arg0, %c0_i32, %c0_i32_0 : i32, i32, i32
  }
  func.func @transform_3(%arg0: i32) -> (i32, i32, i32) {
    %c0_i32 = arith.constant 0 : i32
    %c0_i32_0 = arith.constant 0 : i32
    %c0_i32_1 = arith.constant 0 : i32
    return %arg0, %c0_i32, %c0_i32_0 : i32, i32, i32
  }
  func.func @transform_4(%arg0: i32) -> (i32, i32) {
    %c0_i32 = arith.constant 0 : i32
    %c0_i32_0 = arith.constant 0 : i32
    %c0_i32_1 = arith.constant 0 : i32
    return %c0_i32, %c0_i32_0 : i32, i32
  }
}

</mosaic_0001>

<bundles_post_ra>
// kernel: tpu_custom_call.1
= control target key start
LH: loop header
LB: loop body
LE: loop exit
PB: predicated region body
PF: predicated region fallthrough
CT: control target
= control target key end

     0   :  { %s1321_s0 = inlined_call_operand.hbm [shape: f32[8,128], index: 0, kind: input, shape index: {}]   ;;  %s1322_s1 = inlined_call_operand.hbm [shape: f32[8,128], index: 1, kind: input, shape index: {}]   ;;  %s1323_s2 = inlined_call_operand.hbm [shape: f32[4,128,128], index: 2, kind: input, shape index: {}]   ;;  %s1324_s3 = inlined_call_operand.hbm [shape: f32[4,128,128], index: 3, kind: input, shape index: {}]   ;;  %s1325_s4 = inlined_call_operand.hbm [shape: f32[8,128], index: 4, kind: output, shape index: {}]  }
   0x1   :  { %1333 = sst [smem:[#allocation15_spill]] %s1321_s0 }
   0x2   :  { %1334 = sst [smem:[#allocation16_spill]] %s1323_s2 }
   0x3   :  { %9 = vsyncpa [#allocation3], 0 }
   0x4   :  { %10 = vsyncpa [#allocation6], 0 }
   0x5   :  { %11 = vsyncpa [#allocation4], 0  ;;  %s1023_s15 = smov 0   ;;  %s1025_s16 = smov 0  }
   0x6   :  { %s1027_s17 = smov 0   ;;  %s1029_s18 = smov 0  }
   0x7 LB: > { %s1042_s19 = sadd.s32 4294967295, %s986_s18   ;;  %s1045_s20 = sadd.s32 1, %s986_s18   ;;  %s986_s18 = sphi %s1029_s18, %s1360_s18   ;;  %s982_s17 = sphi %s1027_s17, %s1359_s17   ;;  %s978_s16 = sphi %s1025_s16, %s1358_s16   ;;  %s974_s15 = sphi %s1023_s15, %s1357_s15  }
   0x8   : > { %s63_s21 = ssub.s32 %s986_s18, %s1045_s20  ;;  %s66_s22 = sadd.s32 1, %s982_s17 }
   0x9   : > { %p64_p0 = scmp.eq.s32.totalorder %s63_s21, 0  ;;  %p73_p1 = scmp.ne.s32.totalorder %s982_s17, %s978_s16 }
   0xa   : > { %p74_p2 = scmp.eq.s32.totalorder %s986_s18, 0  ;;  %p79_p3 = scmp.ne.s32.totalorder %s978_s16, %s974_s15 }
   0xb   : > { %s1055_s23 = scalar_select %p64_p0, %s982_s17, %s66_s22  }
   0xc   : > { %p1057_p4 = por %p74_p2, %p73_p1  ;;  %p1326_p5 = scmp.eq.s32.totalorder %s1042_s19, 0 }
   0xd   : > { %1335 = sst [smem:[#allocation14_spill]] %s1055_s23  ;;  %p545_p6 = scmp.ge.s32.totalorder %s986_s18, 1 }
   0xe   : > { %p137_p7 = scmp.lt.s32.totalorder %s986_s18, 5  ;;  %p1066_p8 = por %p1326_p5, %p79_p3 }
   0xf   : > { %s988_s27 = smov [#allocation2]   ;;  %p751_p12 = scmp.lt.s32.totalorder %s986_s18, 4 }
  0x10   : > { %s1337_s25 = scalar_select %p1066_p8, 1, 0 }
  0x11   : > { %p1071_p10 = pnand %p545_p6, %p137_p7  ;;  %s150_s28 = sshll.u32 %s988_s27, 4  ;;  %s151_s28 = int_to_ptr.vmem [resolvable:$true] %s150_s28 }
  0x12   : > { %s172_s29 = sand.u32 1, %s986_s18   ;;  %p1087_p0 = pnand %p751_p12, %p1057_p4 }
  0x13   : > { %s1338_s26 = scalar_select %p1071_p10, 1, 0 }
  0x14   : > { %p735_p11 = pneg %p1071_p10  ;;  %s174_s6 = sand.u32 1, %s982_s17  }
  0x15   : > { %s1340_s5 = scalar_select %p1087_p0, 1, 0 }
  0x16   : > { %p1081_p13 = pnand %p735_p11, %p1326_p5  ;;  %s1092_s7 = sshll.u32 %s174_s6, 7 }
  0x17   : > { %s1341_s0 = sld [smem:[#allocation15_spill]] }
  0x18   : > { %p1330_p2 = pneg %p1081_p13 }
  0x1d   : > { %s798_s10 = scalar_lea.hbm %s1341_s0, 128 }
  0x1e   : > { %p799_p1 = scmp.ne.s32.totalorder %s1341_s0, %s798_s10  ;;  %p805_p6 = scmp.lt.u32.totalorder %s798_s10, %s1341_s0 }
  0x20   : > { %p801_p3 = pnand %p1330_p2, %p799_p1 }
  0x22   : > { %p802_p4 = pneg %p801_p3 }
  0x24   : > { %p807_p7 = pnand %p805_p6, %p802_p4 }
  0x26   : > { %810 = shalt.err (!%p807_p7)
}
  0x27   : > { %s811_s15 = scalar_lea.vmem %s151_s28, 128  ;;  %p819_p5 = scmp.lt.s32.totalorder %s151_s28, %s151_s28 }
  0x28   : > { %p812_p11 = scmp.ne.s32.totalorder %s151_s28, %s811_s15  ;;  %p820_p8 = scmp.lt.s32.totalorder %s811_s15, %s811_s15 }
  0x2a   : > { %p814_p12 = pnand %p812_p11, %p1330_p2  ;;  %p821_p10 = por %p820_p8, %p819_p5 }
  0x2c   : > { %p815_p9 = pneg %p814_p12 }
  0x2e   : > { %p822_p0 = pnand %p821_p10, %p815_p9 }
  0x30   : > { %825 = shalt.err (!%p822_p0)
}
  0x31   : > { %738 = dma.hbm_to_vmem [thread:$0]  (!%p1081_p13), %s1341_s0, 128, %s151_s28, [#allocation3]  }
  0x32   : > { %s565_s24 = sshll.u32 %s986_s18, 11  ;;  %s176_s27 = scalar_lea.vmem [#allocation7], %s1092_s7 }
  0x33   : > { %s183_s6 = sshll.u32 %s176_s27, 4  ;;  %s1342_s2 = sld [smem:[#allocation16_spill]]  ;;  %s1125_s6 = int_to_ptr.vmem [resolvable:$true] %s183_s6 }
  0x34   : > { %s1127_s11 = scalar_lea.sflag [#allocation3], %s172_s29  ;;  %p1343_p8 = scmp.ne.s32.totalorder %s1340_s5, 0 }
  0x36   : > { %p1331_p9 = pneg %p1343_p8 }
  0x39   : > { %s1123_s10 = scalar_lea.hbm %s1342_s2, %s565_s24  ;;  %s831_s14 = scalar_lea.hbm %s1342_s2, 8192 }
  0x3a   : > { %s826_s12 = scalar_lea.hbm %s1123_s10, 2048  ;;  %p832_p1 = scmp.lt.u32.totalorder %s1123_s10, %s1342_s2 }
  0x3b   : > { %p827_p5 = scmp.ne.s32.totalorder %s1123_s10, %s826_s12  ;;  %p833_p3 = scmp.lt.u32.totalorder %s831_s14, %s826_s12 }
  0x3c   : > { %p835_p6 = scmp.lt.u32.totalorder %s826_s12, %s1123_s10 }
  0x3d   : > { %p829_p10 = pnand %p1331_p9, %p827_p5  ;;  %p834_p4 = por %p833_p3, %p832_p1 }
  0x3f   : > { %p830_p0 = pneg %p829_p10  ;;  %p836_p7 = por %p835_p6, %p834_p4 }
  0x41   : > { %p837_p11 = pnand %p836_p7, %p830_p0 }
  0x43   : > { %840 = shalt.err (!%p837_p11)
}
  0x44   : > { %s841_s29 = scalar_lea.vmem %s1125_s6, 2048  ;;  %s989_s22 = smov [#allocation7]  }
  0x45   : > { %p842_p12 = scmp.ne.s32.totalorder %s1125_s6, %s841_s29  ;;  %s846_s27 = sshll.u32 %s989_s22, 4  ;;  %s847_s27 = int_to_ptr.vmem [resolvable:$false] %s846_s27 }
  0x46   : > { %s848_s8 = scalar_lea.vmem %s847_s27, 4096  ;;  %p849_p2 = scmp.lt.s32.totalorder %s1125_s6, %s847_s27 }
  0x47   : > { %p844_p5 = pnand %p842_p12, %p1331_p9  ;;  %p850_p1 = scmp.lt.s32.totalorder %s848_s8, %s841_s29 }
  0x49   : > { %p845_p10 = pneg %p844_p5  ;;  %p851_p3 = por %p850_p1, %p849_p2 }
  0x4b   : > { %p852_p4 = pnand %p851_p3, %p845_p10 }
  0x4d   : > { %855 = shalt.err (!%p852_p4)
}
  0x4e   : > { %s990_s9 = smov 128   ;;  %s991_s12 = smov 8  }
  0x4f   : > { %745 = dma.hbm_to_vmem [thread:$0]  (!%p1343_p8), %s1123_s10, 2048, %s1125_s6, %s1127_s11, %s990_s9, %s990_s9, %s991_s12  }
  0x50   : > { %s992_s28 = smov [#allocation5]   ;;  %s1163_s21 = scalar_lea.hbm %s1324_s3, %s565_s24 }
  0x51   : > { %s161_s13 = sshll.u32 %s992_s28, 4  ;;  %s197_s29 = scalar_lea.vmem [#allocation8], %s1092_s7  ;;  %s162_s13 = int_to_ptr.vmem [resolvable:$true] %s161_s13 }
  0x52   : > { %s204_s22 = sshll.u32 %s197_s29, 4  ;;  %s856_s0 = scalar_lea.hbm %s1322_s1, 128  ;;  %s1186_s22 = int_to_ptr.vmem [resolvable:$true] %s204_s22 }
  0x53   : > { %p857_p2 = scmp.ne.s32.totalorder %s1322_s1, %s856_s0  ;;  %p1344_p0 = pneg %p1081_p13 }
  0x54   : > { %p863_p11 = scmp.lt.u32.totalorder %s856_s0, %s1322_s1 }
  0x55   : > { %p859_p6 = pnand %p857_p2, %p1344_p0 }
  0x57   : > { %p860_p7 = pneg %p859_p6 }
  0x59   : > { %p865_p12 = pnand %p863_p11, %p860_p7 }
  0x5b   : > { %868 = shalt.err (!%p865_p12)
}
  0x5c   : > { %s869_s7 = scalar_lea.vmem %s162_s13, 128  ;;  %p1345_p10 = pmov %p1344_p0 }
  0x5d   : > { %p870_p5 = scmp.ne.s32.totalorder %s162_s13, %s869_s7  ;;  %p877_p4 = scmp.lt.s32.totalorder %s162_s13, %s162_s13 }
  0x5e   : > { %p878_p9 = scmp.lt.s32.totalorder %s869_s7, %s869_s7 }
  0x5f   : > { %p872_p1 = pnand %p870_p5, %p1345_p10 }
  0x60   : > { %p879_p8 = por %p878_p9, %p877_p4 }
  0x61   : > { %p873_p3 = pneg %p872_p1 }
  0x63   : > { %p880_p0 = pnand %p879_p8, %p873_p3 }
  0x65   : > { %883 = shalt.err (!%p880_p0)
}
  0x66   : > { %741 = dma.hbm_to_vmem [thread:$0]  (!%p1081_p13), %s1322_s1, 128, %s162_s13, [#allocation6]  }
  0x67   : > { %s884_s0 = scalar_lea.hbm %s1163_s21, 2048  ;;  %p1346_p6 = scmp.ne.s32.totalorder %s1340_s5, 0 }
  0x68   : > { %p885_p2 = scmp.ne.s32.totalorder %s1163_s21, %s884_s0  ;;  %s889_s30 = scalar_lea.hbm %s1324_s3, 8192 }
  0x69   : > { %p1347_p7 = pneg %p1346_p6  ;;  %p890_p11 = scmp.lt.u32.totalorder %s1163_s21, %s1324_s3 }
  0x6a   : > { %p891_p12 = scmp.lt.u32.totalorder %s889_s30, %s884_s0  ;;  %p893_p10 = scmp.lt.u32.totalorder %s884_s0, %s1163_s21 }
  0x6b   : > { %p887_p9 = pnand %p885_p2, %p1347_p7 }
  0x6c   : > { %p892_p5 = por %p891_p12, %p890_p11 }
  0x6d   : > { %p888_p8 = pneg %p887_p9 }
  0x6e   : > { %p894_p13 = por %p893_p10, %p892_p5 }
  0x70   : > { %p895_p1 = pnand %p894_p13, %p888_p8 }
  0x72   : > { %898 = shalt.err (!%p895_p1)
}
  0x73   : > { %s899_s13 = scalar_lea.vmem %s1186_s22, 2048  ;;  %p1348_p4 = pmov %p1347_p7 }
  0x74   : > { %p900_p3 = scmp.ne.s32.totalorder %s1186_s22, %s899_s13  ;;  %s993_s15 = smov [#allocation8]  }
  0x75   : > { %s904_s29 = sshll.u32 %s993_s15, 4  ;;  %s905_s29 = int_to_ptr.vmem [resolvable:$false] %s904_s29 }
  0x76   : > { %p902_p0 = pnand %p900_p3, %p1348_p4  ;;  %s906_s27 = scalar_lea.vmem %s905_s29, 4096 }
  0x77   : > { %p907_p7 = scmp.lt.s32.totalorder %s1186_s22, %s905_s29  ;;  %p908_p9 = scmp.lt.s32.totalorder %s906_s27, %s899_s13 }
  0x78   : > { %p903_p2 = pneg %p902_p0 }
  0x79   : > { %p909_p11 = por %p908_p9, %p907_p7 }
  0x7b   : > { %p910_p12 = pnand %p909_p11, %p903_p2 }
  0x7d   : > { %913 = shalt.err (!%p910_p12)
}
  0x7e   : > { %748 = dma.hbm_to_vmem [thread:$0]  (!%p1346_p6), %s1163_s21, 2048, %s1186_s22, %s1127_s11, %s990_s9, %s990_s9, %s991_s12  }
  0x7f   : > { %p1349_p8 = scmp.ne.s32.totalorder %s1338_s26, 0 }
  0x80   : > { %p1350_p5 = scmp.eq.s32.totalorder (!%p1349_p8), %s1042_s19, 0 }
  0x81   : > { %216 = sbr.rel (%p1349_p8) target bundleno = 464 (0x1d0), region = 36 }
  0x88   : > { %957 = dma.done.wait (%p1350_p5), [#allocation3], 128   ;;  %p1351_p10 = pmov %p1350_p5 }
  0x89   : > { %p1352_p13 = pmov %p1350_p5 }
  0x8a   : > { %959 = vsyncadd (%p1351_p10), [#allocation3], 4294967168 }
  0x8b   : > { %961 = dma.done.wait (%p1352_p13), [#allocation6], 128   ;;  %p1353_p1 = pmov %p1350_p5 }
  0x8c   : > { %s226_s5 = sand.u32 1, %s1042_s19   ;;  %s228_s11 = sand.u32 1, %s978_s16  }
  0x8d   : > { %963 = vsyncadd (%p1353_p1), [#allocation6], 4294967168  ;;  %s558_s9 = sshll.u32 %s228_s11, 7  ;;  %s227_s26 = scalar_lea.sflag [#allocation3], %s226_s5 }
  0x8e   : > { %s1227_s12 = scalar_lea.vmem [#allocation7], %s558_s9  ;;  %p1354_p6 = scmp.ne.s32.totalorder %s1337_s25, 0 }
  0x90   : > { %965 = dma.done.wait (%p1354_p6), %s227_s26, 4096  }
  0x91   : > { %967 = vsyncadd (%p1354_p6), %s227_s26, 4294963200  ;;  %s1233_s21 = scalar_lea.vmem [#allocation8], %s558_s9  ;;  %p1355_p3 = scmp.ne.s32.totalorder %s1042_s19, 0 }
  0x92   : > { %v268_v0 = vld [vmem:[#allocation2] sm:$0xff] (!%p1355_p3) }
  0x93   : > { %267 = sbr.rel (%p1355_p3) target bundleno = 154 (0x9a), region = 56  ;;  %269 = vst [vmem:[#allocation9] sm:$0xff] (!%p1355_p3), %v268_v0 }
  0x9a PF: > { %v358_v1 = vld [vmem:[%s1227_s12] sm:$0xff]  ;;  %v359_v2 = vld [vmem:[%s1227_s12 + $0x8] sm:$0xff]  ;;  %v994_v3 = vmov 0.0|0.0   ;;  %vm995_vm0 = vmmov 0   ;;  %v996_v8 = vmov 0.0   ;;  %v360_v9 = vld [vmem:[%s1227_s12 + $0x10] sm:$0xff] }
  0x9b   : > { %695 = vmatprep.subr.bf16.mxu1 %v994_v3  ;;  %v696_v4 = vpack.c.bf16 %v359_v2, %v358_v1  ;;  %671 = vmatprep.subr.bf16.mxu0 %v994_v3  ;;  %v272_v5 = vld [vmem:[%s1233_s21] sm:$0xff]  ;;  %v273_v6 = vld [vmem:[%s1233_s21 + $0x8] sm:$0xff]  ;;  %v361_v10 = vld [vmem:[%s1227_s12 + $0x18] sm:$0xff]  ;;  %s997_s25 = smov [#allocation9]   ;;  %p754_p4 = scmp.eq.s32.totalorder %s1042_s19, 3 }
  0x9c   : > { %v672_v7 = vpack.c.bf16 %v273_v6, %v272_v5  ;;  %668 = vmatprep.mubr.msk.f32.mxu1 %vm995_vm0, %v996_v8  ;;  %633 = vmatprep.mubr.msk.f32.mxu0 %vm995_vm0, %v996_v8  ;;  %v274_v11 = vld [vmem:[%s1233_s21 + $0x10] sm:$0xff]  ;;  %v275_v12 = vld [vmem:[%s1233_s21 + $0x18] sm:$0xff]  ;;  %v699_v13 = vpack.c.bf16 %v361_v10, %v360_v9  ;;  %v362_v15 = vld [vmem:[%s1227_s12 + $0x20] sm:$0xff]  ;;  %s455_s22 = sshll.u32 %s997_s25, 4  ;;  %s456_s22 = int_to_ptr.vmem [resolvable:$true] %s455_s22 }
  0x9d   : > { %697 = vmatpush3.bf16.xpose.msra.mxu1 %v696_v4  ;;  %v675_v14 = vpack.c.bf16 %v275_v12, %v274_v11  ;;  %v363_v16 = vld [vmem:[%s1227_s12 + $0x28] sm:$0xff]  ;;  %v276_v17 = vld [vmem:[%s1233_s21 + $0x20] sm:$0xff]  ;;  %v364_v21 = vld [vmem:[%s1227_s12 + $0x30] sm:$0xff]  ;;  %s914_s8 = scalar_lea.vmem %s456_s22, 128  ;;  %p921_p9 = scmp.lt.s32.totalorder %s456_s22, %s456_s22 }
  0x9e   : > { %698 = vmatprep.subr.bf16.mxu1 %v994_v3  ;;  %673 = vmatpush3.bf16.xpose.msra.mxu0 %v672_v7  ;;  %v277_v18 = vld [vmem:[%s1233_s21 + $0x28] sm:$0xff]  ;;  %v702_v19 = vpack.c.bf16 %v363_v16, %v362_v15  ;;  %v365_v22 = vld [vmem:[%s1227_s12 + $0x38] sm:$0xff]  ;;  %v278_v23 = vld [vmem:[%s1233_s21 + $0x30] sm:$0xff]  ;;  %p915_p0 = scmp.ne.s32.totalorder %s456_s22, %s914_s8  ;;  %p922_p11 = scmp.lt.s32.totalorder %s914_s8, %s914_s8 }
  0x9f   : > { %674 = vmatprep.subr.bf16.mxu0 %v994_v3  ;;  %v678_v20 = vpack.c.bf16 %v277_v18, %v276_v17  ;;  %v279_v24 = vld [vmem:[%s1233_s21 + $0x38] sm:$0xff]  ;;  %v705_v25 = vpack.c.bf16 %v365_v22, %v364_v21  ;;  %v366_v27 = vld [vmem:[%s1227_s12 + $0x40] sm:$0xff]  ;;  %v367_v28 = vld [vmem:[%s1227_s12 + $0x48] sm:$0xff] }
  0xa0   : > { %v681_v26 = vpack.c.bf16 %v279_v24, %v278_v23  ;;  %v280_v29 = vld [vmem:[%s1233_s21 + $0x40] sm:$0xff]  ;;  %v281_v30 = vld [vmem:[%s1233_s21 + $0x48] sm:$0xff]  ;;  %v708_v31 = vpack.c.bf16 %v367_v28, %v366_v27  ;;  %v368_v33 = vld [vmem:[%s1227_s12 + $0x50] sm:$0xff]  ;;  %p916_p2 = pnand %p915_p0, %p754_p4  ;;  %p923_p12 = por %p922_p11, %p921_p9 }
  0xa1   : > { %v684_v32 = vpack.c.bf16 %v281_v30, %v280_v29  ;;  %v369_v34 = vld [vmem:[%s1227_s12 + $0x58] sm:$0xff]  ;;  %v282_v35 = vld [vmem:[%s1233_s21 + $0x50] sm:$0xff]  ;;  %v370_v39 = vld [vmem:[%s1227_s12 + $0x60] sm:$0xff] }
  0xa2   : > { %v283_v36 = vld [vmem:[%s1233_s21 + $0x58] sm:$0xff]  ;;  %v711_v37 = vpack.c.bf16 %v369_v34, %v368_v33  ;;  %v371_v40 = vld [vmem:[%s1227_s12 + $0x68] sm:$0xff]  ;;  %v284_v41 = vld [vmem:[%s1233_s21 + $0x60] sm:$0xff]  ;;  %p917_p7 = pneg %p916_p2 }
  0xa3   : > { %v687_v38 = vpack.c.bf16 %v283_v36, %v282_v35  ;;  %v285_v42 = vld [vmem:[%s1233_s21 + $0x68] sm:$0xff]  ;;  %v714_v43 = vpack.c.bf16 %v371_v40, %v370_v39  ;;  %v372_v45 = vld [vmem:[%s1227_s12 + $0x70] sm:$0xff]  ;;  %v373_v46 = vld [vmem:[%s1227_s12 + $0x78] sm:$0xff] }
  0xa4   : > { %v690_v44 = vpack.c.bf16 %v285_v42, %v284_v41  ;;  %v286_v47 = vld [vmem:[%s1233_s21 + $0x70] sm:$0xff]  ;;  %v287_v48 = vld [vmem:[%s1233_s21 + $0x78] sm:$0xff]  ;;  %v717_v49 = vpack.c.bf16 %v373_v46, %v372_v45  ;;  %v270_v51 = vld [vmem:[#allocation9] sm:$0xff]  ;;  %p924_p8 = pnand %p923_p12, %p917_p7 }
  0xa5   : > { %700 = vmatpush3.bf16.xpose.msra.mxu1 %v699_v13  ;;  %v693_v50 = vpack.c.bf16 %v287_v48, %v286_v47  ;;  %v271_v52 = vld [vmem:[#allocation5] sm:$0xff] }
  0xa6   : > { %701 = vmatprep.subr.bf16.mxu1 %v994_v3  ;;  %676 = vmatpush3.bf16.xpose.msra.mxu0 %v675_v14 }
  0xa7   : > { %677 = vmatprep.subr.bf16.mxu0 %v994_v3 }
  0xad   : > { %703 = vmatpush3.bf16.xpose.msra.mxu1 %v702_v19 }
  0xae   : > { %704 = vmatprep.subr.bf16.mxu1 %v994_v3  ;;  %679 = vmatpush3.bf16.xpose.msra.mxu0 %v678_v20 }
  0xaf   : > { %680 = vmatprep.subr.bf16.mxu0 %v994_v3 }
  0xb5   : > { %706 = vmatpush3.bf16.xpose.msra.mxu1 %v705_v25 }
  0xb6   : > { %707 = vmatprep.subr.bf16.mxu1 %v994_v3  ;;  %682 = vmatpush3.bf16.xpose.msra.mxu0 %v681_v26 }
  0xb7   : > { %683 = vmatprep.subr.bf16.mxu0 %v994_v3 }
  0xbd   : > { %709 = vmatpush3.bf16.xpose.msra.mxu1 %v708_v31 }
  0xbe   : > { %710 = vmatprep.subr.bf16.mxu1 %v994_v3  ;;  %685 = vmatpush3.bf16.xpose.msra.mxu0 %v684_v32 }
  0xbf   : > { %686 = vmatprep.subr.bf16.mxu0 %v994_v3 }
  0xc5   : > { %712 = vmatpush3.bf16.xpose.msra.mxu1 %v711_v37 }
  0xc6   : > { %713 = vmatprep.subr.bf16.mxu1 %v994_v3  ;;  %688 = vmatpush3.bf16.xpose.msra.mxu0 %v687_v38 }
  0xc7   : > { %689 = vmatprep.subr.bf16.mxu0 %v994_v3 }
  0xcd   : > { %715 = vmatpush3.bf16.xpose.msra.mxu1 %v714_v43 }
  0xce   : > { %716 = vmatprep.subr.bf16.mxu1 %v994_v3  ;;  %691 = vmatpush3.bf16.xpose.msra.mxu0 %v690_v44 }
  0xcf   : > { %692 = vmatprep.subr.bf16.mxu0 %v994_v3 }
  0xd5   : > { %718 = vmatpush3.bf16.xpose.msra.mxu1 %v717_v49 }
  0xd6   : > { %694 = vmatpush3.bf16.xpose.msra.mxu0 %v693_v50 }
  0xdc   : > { %669 = vmatmul.mubr.f32.vlgmr.msra.gmra.mrb[0].mxu1 %v270_v51 }
  0xdd   : > { %634 = vmatmul.mubr.f32.vlgmr.msra.gmra.mrb[0].mxu0 %v271_v52 }
 0x1af   : > { %v440_v53 = vpop.f32.mrb[0].mxu1 }
 0x1b0   : > { %v441_v54 = vadd.f32 0.10000012, %v440_v53  ;;  %v670_v55 = vpop.f32.mrb[1].mxu1  ;;  %v354_v56 = vpop.f32.mrb[0].mxu0 }
 0x1b1   : > { %v635_v57 = vpop.f32.mrb[1].mxu0 }
 0x1b2   : > { %796 = vrcp.f32 %v441_v54 }
 0x1bc   : > { %v797_v58 = vpop.eup %796 }
 0x1bd   : > { %v445_v59 = vmul.f32 %v797_v58, %v354_v56 }
 0x1bf   : > { %v446_v60 = vmul.f32 %v445_v59, %v270_v51 }
 0x1c1   : > { %447 = vst [vmem:[#allocation9] sm:$0xff] %v446_v60 }
 0x1c2   : > { %927 = shalt.err (!%p924_p8)
}
 0x1c3   : > { %s928_s7 = scalar_lea.hbm %s1325_s4, 128 }
 0x1c4   : > { %p929_p5 = scmp.ne.s32.totalorder %s1325_s4, %s928_s7  ;;  %p934_p1 = scmp.lt.u32.totalorder %s928_s7, %s1325_s4 }
 0x1c6   : > { %p930_p10 = pnand %p929_p5, %p754_p4 }
 0x1c8   : > { %p931_p13 = pneg %p930_p10 }
 0x1ca   : > { %p936_p6 = pnand %p934_p1, %p931_p13 }
 0x1cc   : > { %939 = shalt.err (!%p936_p6)
}
 0x1cd   : > { %732 = dma.vmem_to_hbm [thread:$0]  (%p754_p4), %s456_s22, 128, %s1325_s4, [#allocation4]  }
 0x1ce   : > { %969 = dma.done.wait (%p754_p4), [#allocation4], 128  }
 0x1cf   : > { %971 = vsyncadd (%p754_p4), [#allocation4], 4294967168 }
 0x1d0 PF: > { %s1356_s28 = sld [smem:[#allocation14_spill]]  ;;  %p14_p3 = scmp.ge.s32.totalorder %s1045_s20, 6  }
 0x1d1   : > { %s1357_s15 = smov %s978_s16  ;;  %s1358_s16 = smov %s982_s17 }
 0x1d2   : > { %s1360_s18 = smov %s1045_s20  ;;  %16 = sbr.rel (!%p14_p3) target bundleno = 7 (0x7), region = 95 }
 0x1d6   : > { %s1359_s17 = smov %s1356_s28 }
 0x1d9   :  { %468 = vsyncpa [#allocation3], 1 }
 0x1da   :  { %470 = vsyncpa [#allocation3 + $0x1], 1 }
 0x1db   :  { %471 = vsyncpa [#allocation6], 1 }
 0x1dc   :  { %472 = vsyncpa [#allocation4], 1 }
 0x1dd   :  { %474 = vsyncpa [#allocation4 + $0x1], 1 }

</bundles_post_ra>
